<compile_context>
chip_gen: v6e
topology: v6e:2x2x1
jax: 0.10.0
libtpu: 0.0.40
codegen_flags: <defaults>
</compile_context>

<pallas_src>
import functools

import jax
import jax.numpy as jnp
from jax.experimental import pallas as pl
from jax.experimental.pallas import tpu as pltpu


def _lane_dense_rc(S, E):
    """Pick a lane-dense [R, C] view of one [S, E] plane (R * C == S * E)."""
    if E % 128 == 0:
        return S, E
    if (S * E) % 128 == 0:
        return (S * E) // 128, 128
    return S, E  # fallback: not lane-dense, still correct


def _pick_block(B, R, C, itemsize, target_bytes=2 << 20):
    """Choose (batch_tile, row_tile) so each x block is roughly target_bytes."""
    plane_bytes = R * C * itemsize
    if plane_bytes <= target_bytes:
        tb = int(max(1, min(B, target_bytes // max(plane_bytes, 1))))
        tr = R
    else:
        tb = 1
        tr = int(max(8, (target_bytes // (C * itemsize)) // 8 * 8))
        tr = min(tr, R)
        if R < 8:
            tr = R
    return tb, tr


def _pe_add_kernel(x_ref, pe_ref, o_ref):
    # x_ref: (TB, TR, C), pe_ref: (TR, C) -> broadcast add over batch tile.
    o_ref[...] = x_ref[...] + pe_ref[...]


def _pe_add_dropout_kernel(x_ref, pe_ref, bits_ref, o_ref, *, threshold, scale):
    val = x_ref[...] + pe_ref[...]
    # integer-threshold dropout: keep with probability 1 - p
    keep = bits_ref[...] >= jnp.uint32(threshold)
    scaled = val * jnp.asarray(scale, val.dtype)
    o_ref[...] = jnp.where(keep, scaled, jnp.zeros((), val.dtype)).astype(o_ref.dtype)


def positional_encoding_forward(x, pe, *, dropout_p=0.0, training=False, key=None):
    """out = dropout(x + pe) with x: [B, S, E], pe: [S, E]."""
    B, S, E = x.shape
    assert pe.shape == (S, E)
    assert 0.0 <= float(dropout_p) < 1.0, "dropout_p must be in [0, 1)"

    R, C = _lane_dense_rc(S, E)
    xr = x.reshape(B, R, C)
    per = pe.astype(x.dtype).reshape(R, C)

    tb, tr = _pick_block(B, R, C, x.dtype.itemsize)
    grid = (pl.cdiv(B, tb), pl.cdiv(R, tr))

    in_specs = [
        pl.BlockSpec((tb, tr, C), lambda b, r: (b, r, 0)),   # x tile
        pl.BlockSpec((tr, C), lambda b, r: (r, 0)),          # PE tile (batch-invariant)
    ]
    args = [xr, per]

    apply_dropout = bool(training) and float(dropout_p) > 0.0
    if apply_dropout:
        if key is None:
            key = jax.random.PRNGKey(0)
        bits = jax.random.bits(key, (B, R, C), dtype=jnp.uint32)
        in_specs.append(pl.BlockSpec((tb, tr, C), lambda b, r: (b, r, 0)))
        args.append(bits)
        threshold = min(int(round(float(dropout_p) * 2.0 ** 32)), 2 ** 32 - 1)
        scale = 1.0 / (1.0 - float(dropout_p))
        kernel = functools.partial(_pe_add_dropout_kernel,
                                   threshold=threshold, scale=scale)
    else:
        kernel = _pe_add_kernel

    out = pl.pallas_call(
        kernel,
        out_shape=jax.ShapeDtypeStruct((B, R, C), x.dtype),
        grid_spec=pltpu.PrefetchScalarGridSpec(
            num_scalar_prefetch=0,
            grid=grid,
            in_specs=in_specs,
            out_specs=pl.BlockSpec((tb, tr, C), lambda b, r: (b, r, 0)),
        ),
        compiler_params=pltpu.CompilerParams(
            dimension_semantics=("parallel", "parallel")),
    )(*args)
    return out.reshape(B, S, E)


def make_positional_encoding_table(embed, pad_size, dtype=jnp.float32):
    """Reproduces the PyTorch __init__ PE table exactly."""
    pos = jnp.arange(pad_size, dtype=jnp.float32)[:, None]           # [pad_size, 1]
    i = jnp.arange(embed, dtype=jnp.float32)[None, :]                 # [1, embed]
    div = jnp.power(10000.0, (jnp.floor(i / 2.0) * 2.0) / float(embed))
    angles = pos / div                                                # [pad_size, embed]
    even_mask = (jnp.arange(embed) % 2 == 0)[None, :]
    pe = jnp.where(even_mask, jnp.sin(angles), jnp.cos(angles))
    return pe.astype(dtype)


if __name__ == "__main__":
    key = jax.random.PRNGKey(0)
    B, S, E = 2, 8, 32          # batch=2, pad_size=8, embed=32
    dropout_p = 0.1

    x = jax.random.normal(key, (B, S, E), dtype=jnp.float32)
    pe = make_positional_encoding_table(E, S)
    ref = x + pe[None, :, :]

    # Eval-mode path (dropout is identity): verify against pure-JAX reference.
    out_eval = positional_encoding_forward(x, pe, dropout_p=dropout_p, training=False)
    out_eval = jax.block_until_ready(out_eval)
    assert jnp.allclose(out_eval, ref, atol=1e-6), "eval-mode mismatch"

    # Training-mode path: the dropout mask is deterministic given the key, so
    # check exactly against a pure-JAX reference using the same bits.
    drop_key = jax.random.PRNGKey(1234)
    out_train = positional_encoding_forward(x, pe, dropout_p=dropout_p,
                                            training=True, key=drop_key)
    out_train = jax.block_until_ready(out_train)
    assert out_train.shape == (B, S, E)

    R, C = _lane_dense_rc(S, E)
    bits_ref = jax.random.bits(drop_key, (B, R, C), dtype=jnp.uint32)
    threshold = min(int(round(dropout_p * 2.0 ** 32)), 2 ** 32 - 1)
    keep_ref = (bits_ref >= jnp.uint32(threshold)).reshape(B, S, E)
    expected = jnp.where(keep_ref, ref / (1.0 - dropout_p), 0.0)
    assert jnp.allclose(out_train, expected, atol=1e-5), "dropout mismatch"

    print("KERNEL_OK")
</pallas_src>

<mosaic_0001>
module attributes {stable_mosaic.version = 11 : i64} {
  func.func @_pe_add_kernel(%arg0: i32, %arg1: i32, %arg2: memref<2x2x128xf32, #tpu.memory_space<vmem>>, %arg3: memref<2x128xf32, #tpu.memory_space<vmem>>, %arg4: memref<2x2x128xf32, #tpu.memory_space<vmem>>) attributes {dimension_semantics = [#tpu.dimension_semantics<parallel>, #tpu.dimension_semantics<parallel>], iteration_bounds = array<i64: 1, 1>, scalar_prefetch = 0 : i64, scratch_operands = 0 : i64, tpu.core_type = #tpu.core_type<tc>, window_params = [{transform_indices = @transform_0, window_bounds = array<i64: 2, 2, 128>}, {transform_indices = @transform_1, window_bounds = array<i64: 2, 128>}, {transform_indices = @transform_2, window_bounds = array<i64: 2, 2, 128>}]} {
    %c0 = arith.constant 0 : index
    %c0_0 = arith.constant 0 : index
    %c0_1 = arith.constant 0 : index
    %0 = vector.load %arg2[%c0, %c0_0, %c0_1] : memref<2x2x128xf32, #tpu.memory_space<vmem>>, vector<2x2x128xf32>
    %c0_2 = arith.constant 0 : index
    %c0_3 = arith.constant 0 : index
    %1 = vector.load %arg3[%c0_2, %c0_3] : memref<2x128xf32, #tpu.memory_space<vmem>>, vector<2x128xf32>
    %2 = vector.shape_cast %1 : vector<2x128xf32> to vector<1x2x128xf32>
    %3 = vector.broadcast %2 : vector<1x2x128xf32> to vector<2x2x128xf32>
    %4 = arith.addf %0, %3 : vector<2x2x128xf32>
    %c0_4 = arith.constant 0 : index
    %c0_5 = arith.constant 0 : index
    %c0_6 = arith.constant 0 : index
    %5 = vector.load %arg4[%c0_4, %c0_5, %c0_6] : memref<2x2x128xf32, #tpu.memory_space<vmem>>, vector<2x2x128xf32>
    tpu.vector_store %arg4[%c0_4, %c0_5, %c0_6], %4 {strides = array<i32>} : memref<2x2x128xf32, #tpu.memory_space<vmem>>, vector<2x2x128xf32>,
    return
  }
  func.func @transform_0(%arg0: i32, %arg1: i32) -> (i32, i32, i32) {
    %c0_i32 = arith.constant 0 : i32
    %c0_i32_0 = arith.constant 0 : i32
    return %arg0, %arg1, %c0_i32 : i32, i32, i32
  }
  func.func @transform_1(%arg0: i32, %arg1: i32) -> (i32, i32) {
    %c0_i32 = arith.constant 0 : i32
    %c0_i32_0 = arith.constant 0 : i32
    return %arg1, %c0_i32 : i32, i32
  }
  func.func @transform_2(%arg0: i32, %arg1: i32) -> (i32, i32, i32) {
    %c0_i32 = arith.constant 0 : i32
    %c0_i32_0 = arith.constant 0 : i32
    return %arg0, %arg1, %c0_i32 : i32, i32, i32
  }
}

</mosaic_0001>

<bundles_post_ra>
// kernel: tpu_custom_call.1
= control target key start
LH: loop header
LB: loop body
LE: loop exit
PB: predicated region body
PF: predicated region fallthrough
CT: control target
= control target key end

     0   :  { %7 = vsyncpa [#allocation3], 0  ;;  %s169_s0 = inlined_call_operand.hbm [shape: f32[2,2,128], index: 0, kind: input, shape index: {}]   ;;  %s170_s1 = inlined_call_operand.hbm [shape: f32[2,128], index: 1, kind: input, shape index: {}]   ;;  %s171_s2 = inlined_call_operand.hbm [shape: f32[2,2,128], index: 2, kind: output, shape index: {}]  }
   0x1   :  { %8 = vsyncpa [#allocation6], 0 }
   0x2   :  { %9 = vsyncpa [#allocation4], 0  ;;  %s134_s9 = smov [#allocation2]  }
   0x3   :  { %s15_s10 = sshll.u32 %s134_s9, 4  ;;  %s16_s10 = int_to_ptr.vmem [resolvable:$true] %s15_s10 }
   0x4   :  { %s76_s11 = scalar_lea.vmem %s16_s10, 64  ;;  %p81_p1 = scmp.lt.s32.totalorder %s16_s10, %s16_s10 }
   0x5   :  { %p77_p0 = scmp.ne.s32.totalorder %s16_s10, %s76_s11  ;;  %p82_p2 = scmp.lt.s32.totalorder %s76_s11, %s76_s11 }
   0x7   :  { %p83_p3 = por %p82_p2, %p81_p1 }
   0x9   :  { %p84_p4 = pnand %p83_p3, %p77_p0 }
   0xb   :  { %87 = shalt.err (!%p84_p4)
}
   0xc   :  { %s135_s12 = smov 32   ;;  %s136_s13 = smov 2  }
   0xd   :  { %21 = dma.hbm_to_vmem [thread:$0]  %s169_s0, 64, %s16_s10, [#allocation3], %s135_s12, %s135_s12, %s136_s13  }
   0xe   :  { %s137_s16 = smov [#allocation5]  }
   0xf   :  { %s28_s17 = sshll.u32 %s137_s16, 4  ;;  %s29_s17 = int_to_ptr.vmem [resolvable:$true] %s28_s17 }
  0x10   :  { %s96_s18 = scalar_lea.vmem %s29_s17, 32  ;;  %p101_p6 = scmp.lt.s32.totalorder %s29_s17, %s29_s17 }
  0x11   :  { %p97_p5 = scmp.ne.s32.totalorder %s29_s17, %s96_s18  ;;  %p102_p7 = scmp.lt.s32.totalorder %s96_s18, %s96_s18 }
  0x13   :  { %p103_p8 = por %p102_p7, %p101_p6 }
  0x15   :  { %p104_p9 = pnand %p103_p8, %p97_p5 }
  0x17   :  { %107 = shalt.err (!%p104_p9)
}
  0x18   :  { %31 = dma.hbm_to_vmem [thread:$0]  %s170_s1, 32, %s29_s17, [#allocation6]  }
  0x19   :  { %128 = dma.done.wait [#allocation3], 64  }
  0x1a   :  { %129 = vsyncadd [#allocation3], 4294967232 }
  0x1b   :  { %130 = dma.done.wait [#allocation6], 32  }
  0x1c   :  { %131 = vsyncadd [#allocation6], 4294967264  ;;  %s138_s21 = smov [#allocation7]   ;;  %v38_v0 = vld [vmem:[#allocation2] sm:$0x3] }
  0x1d   :  { %s50_s0 = sshll.u32 %s138_s21, 4  ;;  %v40_v1 = vld [vmem:[#allocation5] sm:$0x3]  ;;  %v39_v2 = vld [vmem:[#allocation2 + $0x2] sm:$0x3]  ;;  %s51_s0 = int_to_ptr.vmem [resolvable:$true] %s50_s0 }
  0x1e   :  { %v41_v3 = vadd.f32 %v40_v1, %v38_v0  ;;  %v42_v4 = vadd.f32 %v40_v1, %v39_v2  ;;  %s108_s22 = scalar_lea.vmem %s51_s0, 64  ;;  %p113_p11 = scmp.lt.s32.totalorder %s51_s0, %s51_s0 }
  0x1f   :  { %p109_p10 = scmp.ne.s32.totalorder %s51_s0, %s108_s22  ;;  %p114_p12 = scmp.lt.s32.totalorder %s108_s22, %s108_s22 }
  0x20   :  { %43 = vst [vmem:[#allocation7] sm:$0x3] %v41_v3  ;;  %44 = vst [vmem:[#allocation7 + $0x2] sm:$0x3] %v42_v4 }
  0x21   :  { %p115_p13 = por %p114_p12, %p113_p11 }
  0x23   :  { %p116_p0 = pnand %p115_p13, %p109_p10 }
  0x25   :  { %119 = shalt.err (!%p116_p0)
}
  0x26   :  { %56 = dma.vmem_to_hbm [thread:$0]  %s51_s0, 64, %s171_s2, [#allocation4], %s135_s12, %s135_s12, %s136_s13  }
  0x27   :  { %132 = dma.done.wait [#allocation4], 64  }
  0x28   :  { %133 = vsyncadd [#allocation4], 4294967232 }
  0x29   :  { %60 = vsyncpa [#allocation3], 1 }
  0x2a   :  { %61 = vsyncpa [#allocation6], 1 }
  0x2b   :  { %62 = vsyncpa [#allocation4], 1 }

</bundles_post_ra>
